<compile_context>
chip_gen: v5e
topology: v5e:2x2
jax: 0.10.0
libtpu: 0.0.40
codegen_flags: <defaults>
</compile_context>

<pallas_src>
import functools
import math

import jax
import jax.numpy as jnp
from jax import lax
from jax.experimental import pallas as pl
from jax.experimental.pallas import tpu as pltpu

_MAX_BLOCK_BYTES = 4 << 20          # 4 MiB output block; 2x when double-buffered
_LANE_CANDIDATES = (1024, 512, 256, 128)


def _sublane(itemsize: int) -> int:
    return {4: 8, 2: 16, 1: 32}.get(itemsize, 8)


def _round_up(x: int, m: int) -> int:
    return ((x + m - 1) // m) * m


def _i32_const(v: int) -> jnp.ndarray:
    """Python int (unsigned 32-bit pattern) -> int32 constant."""
    if v >= (1 << 31):
        v -= 1 << 32
    return jnp.int32(v)


def _srl(x, n: int):
    """Logical right shift of an int32 tensor by a static amount."""
    return lax.shift_right_logical(x, jnp.int32(n))


def _mix32(x):
    """lowbias32 integer hash; pure int32 VPU ops (mul wraps, shifts logical)."""
    x = x ^ _srl(x, 16)
    x = x * _i32_const(0x7FEB352D)
    x = x ^ _srl(x, 15)
    x = x * _i32_const(0x846CA68B)
    x = x ^ _srl(x, 16)
    return x


def _gen_noise_kernel(seed_ref, o_ref, *, pairs_per_block, cols_log2):
    """Fill one (tile_rows, cols) VMEM block with i.i.d. N(0, 1) noise.

    Stateless counter-based PRNG + Box-Muller using BOTH outputs: z0 = r*cos
    goes to rows [0, half), z1 = r*sin goes to rows [half, rows).
    """
    rows, cols = o_ref.shape
    half = rows // 2                       # rows is always even by construction

    # Global pair index, unique across the whole output (int32: fine < 2^31 pairs).
    base = pl.program_id(0) * pairs_per_block
    row_ids = lax.broadcasted_iota(jnp.int32, (half, cols), 0)
    col_ids = lax.broadcasted_iota(jnp.int32, (half, cols), 1)
    # cols is a power of two -> strength-reduce the multiply to a shift.
    pair_idx = base + lax.shift_left(row_ids, jnp.int32(cols_log2)) + col_ids

    # Hash the seed so consecutive seeds give unrelated streams.
    skey = _mix32(seed_ref[0] + _i32_const(0x9E3779B9))
    h0 = _mix32(pair_idx ^ skey)
    h1 = _mix32(h0 ^ _i32_const(0x85EBCA6B))

    # 24-bit-mantissa uniforms: u1 in (0, 1], u2 in [0, 1).
    inv24 = jnp.float32(1.0 / 16777216.0)
    u1 = (_srl(h0, 8).astype(jnp.float32) + 1.0) * inv24
    u2 = _srl(h1, 8).astype(jnp.float32) * inv24

    # Box-Muller in f32; both branches used; cast to output dtype at the store.
    r = jnp.sqrt(jnp.float32(-2.0) * jnp.log(u1))
    theta = jnp.float32(2.0 * math.pi) * u2
    o_ref[0:half, :] = (r * jnp.cos(theta)).astype(o_ref.dtype)
    o_ref[half:rows, :] = (r * jnp.sin(theta)).astype(o_ref.dtype)


def _plan_layout(total: int, itemsize: int):
    """Pick (cols, rows, tile_rows, grid_rows, padded) for the flat noise slab."""
    sub = _sublane(itemsize)

    def tile_for(cols: int, rows: int):
        max_tile = max(sub, ((_MAX_BLOCK_BYTES // (cols * itemsize)) // sub) * sub)
        if rows <= max_tile:
            # Split in two so v7x's second TensorCore gets work, as long as
            # both halves stay sublane-aligned and carry non-trivial work.
            if rows % (2 * sub) == 0 and rows >= 4 * sub:
                return rows // 2, 2
            return rows, 1
        tile = max_tile
        while rows % tile:                 # terminates: rows % sub == 0 here
            tile -= sub
        return tile, rows // tile

    # 1) Exact (no padding), both half-blocks sublane-aligned, widest lanes.
    for cols in _LANE_CANDIDATES:
        if total % cols == 0:
            rows = total // cols
            if rows % (2 * sub) == 0:
                t, g = tile_for(cols, rows)
                return cols, rows, t, g, False
    # 2) Exact, sublane-aligned rows.
    for cols in _LANE_CANDIDATES:
        if total % cols == 0:
            rows = total // cols
            if rows % sub == 0:
                t, g = tile_for(cols, rows)
                return cols, rows, t, g, False
    # 3) Exact, even rows, single small block.
    for cols in _LANE_CANDIDATES:
        if total % cols == 0:
            rows = total // cols
            if rows % 2 == 0 and rows * cols * itemsize <= _MAX_BLOCK_BYTES:
                return cols, rows, rows, 1, False
    # 4) Fallback: pad to a sublane-aligned slab; the wrapper slices the tail.
    cols = _LANE_CANDIDATES[0]
    rows = _round_up(pl.cdiv(total, cols), 2 * sub)
    t, g = tile_for(cols, rows)
    return cols, rows, t, g, True


def gen_noise(x: jax.Array, dim2: int, seed: int = 0) -> jax.Array:
    """Pallas equivalent of GenNoise(dim2)(x) for NCHW input x (shape/dtype only)."""
    N, _, H, W = x.shape
    total = N * dim2 * H * W
    itemsize = jnp.dtype(x.dtype).itemsize

    cols, rows, tile_rows, grid_rows, padded = _plan_layout(total, itemsize)
    pairs_per_block = (tile_rows // 2) * cols
    cols_log2 = int(math.log2(cols))

    seed_arr = jnp.array([seed], dtype=jnp.int32)

    n_elems = rows * cols
    cost = pl.CostEstimate(
        flops=25 * n_elems,               # hash + Box-Muller VALU work, rough
        transcendentals=2 * n_elems,      # (log, cos, sin, sqrt) per pair of outputs
        bytes_accessed=n_elems * itemsize,
    )

    flat = pl.pallas_call(
        functools.partial(
            _gen_noise_kernel,
            pairs_per_block=pairs_per_block,
            cols_log2=cols_log2,
        ),
        out_shape=jax.ShapeDtypeStruct((rows, cols), x.dtype),
        grid_spec=pltpu.PrefetchScalarGridSpec(
            num_scalar_prefetch=1,
            grid=(grid_rows,),
            in_specs=[],
            out_specs=pl.BlockSpec((tile_rows, cols), lambda i, seed: (i, 0)),
        ),
        compiler_params=pltpu.CompilerParams(
            dimension_semantics=("parallel",),   # stateless counter PRNG -> shardable
        ),
        cost_estimate=cost,
    )(seed_arr)

    if padded:
        # Rare fallback (element count with no 128 divisor): one extra slice copy.
        return flat.reshape(-1)[:total].reshape(N, dim2, H, W)
    return flat.reshape(N, dim2, H, W)


if __name__ == "__main__":
    key = jax.random.PRNGKey(0)
    # Small NCHW input consistent with the module's usage.
    x = jax.random.normal(key, (2, 4, 16, 16), dtype=jnp.float32)
    dim2 = 8

    noise = gen_noise(x, dim2, seed=0)
    noise = jax.block_until_ready(noise)

    # Shape/dtype contract of GenNoise, and roughly N(0, 1).
    assert noise.shape == (2, dim2, 16, 16), noise.shape
    assert noise.dtype == x.dtype, noise.dtype
    mean = float(jnp.mean(noise))
    std = float(jnp.std(noise))
    assert abs(mean) < 0.2, mean
    assert 0.8 < std < 1.2, std
    # Per-batch noise must differ (distinct per-element counters).
    assert not bool(jnp.allclose(noise[0], noise[1]))
    # Different seeds give different noise.
    noise2 = jax.block_until_ready(gen_noise(x, dim2, seed=1))
    assert not bool(jnp.allclose(noise, noise2))

    print("KERNEL_OK")
</pallas_src>

<mosaic_0001>
module attributes {stable_mosaic.version = 11 : i64} {
  func.func @_gen_noise_kernel(%arg0: i32, %arg1: memref<1xi32, #tpu.memory_space<smem>>, %arg2: memref<16x256xf32, #tpu.memory_space<vmem>>) attributes {dimension_semantics = [#tpu.dimension_semantics<parallel>], iteration_bounds = array<i64: 1>, scalar_prefetch = 1 : i64, scratch_operands = 0 : i64, tpu.core_type = #tpu.core_type<tc>, window_params = [{transform_indices = @transform_0, window_bounds = array<i64: 16, 256>}]} {
    %c2048_i32 = arith.constant 2048 : i32
    %0 = arith.muli %arg0, %c2048_i32 : i32
    %1 = tpu.iota {dimensions = array<i32: 0>} : vector<8x256xi32>
    %2 = tpu.iota {dimensions = array<i32: 1>} : vector<8x256xi32>
    %c8_i32 = arith.constant 8 : i32
    %3 = vector.broadcast %c8_i32 : i32 to vector<8x256xi32>
    %4 = arith.shli %1, %3 : vector<8x256xi32>
    %5 = vector.broadcast %0 : i32 to vector<8x256xi32>
    %6 = arith.addi %5, %4 : vector<8x256xi32>
    %7 = arith.addi %6, %2 : vector<8x256xi32>
    %c0 = arith.constant 0 : index
    %8 = memref.load %arg1[%c0] : memref<1xi32, #tpu.memory_space<smem>>
    %c-1640531527_i32 = arith.constant -1640531527 : i32
    %9 = arith.addi %8, %c-1640531527_i32 : i32
    %c16_i32 = arith.constant 16 : i32
    %10 = arith.shrui %9, %c16_i32 : i32
    %11 = arith.xori %9, %10 : i32
    %c2146121005_i32 = arith.constant 2146121005 : i32
    %12 = arith.muli %11, %c2146121005_i32 : i32
    %c15_i32 = arith.constant 15 : i32
    %13 = arith.shrui %12, %c15_i32 : i32
    %14 = arith.xori %12, %13 : i32
    %c-2073254261_i32 = arith.constant -2073254261 : i32
    %15 = arith.muli %14, %c-2073254261_i32 : i32
    %c16_i32_0 = arith.constant 16 : i32
    %16 = arith.shrui %15, %c16_i32_0 : i32
    %17 = arith.xori %15, %16 : i32
    %18 = vector.broadcast %17 : i32 to vector<8x256xi32>
    %19 = arith.xori %7, %18 : vector<8x256xi32>
    %c16_i32_1 = arith.constant 16 : i32
    %20 = vector.broadcast %c16_i32_1 : i32 to vector<8x256xi32>
    %21 = arith.shrui %19, %20 : vector<8x256xi32>
    %22 = arith.xori %19, %21 : vector<8x256xi32>
    %c2146121005_i32_2 = arith.constant 2146121005 : i32
    %23 = vector.broadcast %c2146121005_i32_2 : i32 to vector<8x256xi32>
    %24 = arith.muli %22, %23 : vector<8x256xi32>
    %c15_i32_3 = arith.constant 15 : i32
    %25 = vector.broadcast %c15_i32_3 : i32 to vector<8x256xi32>
    %26 = arith.shrui %24, %25 : vector<8x256xi32>
    %27 = arith.xori %24, %26 : vector<8x256xi32>
    %c-2073254261_i32_4 = arith.constant -2073254261 : i32
    %28 = vector.broadcast %c-2073254261_i32_4 : i32 to vector<8x256xi32>
    %29 = arith.muli %27, %28 : vector<8x256xi32>
    %c16_i32_5 = arith.constant 16 : i32
    %30 = vector.broadcast %c16_i32_5 : i32 to vector<8x256xi32>
    %31 = arith.shrui %29, %30 : vector<8x256xi32>
    %32 = arith.xori %29, %31 : vector<8x256xi32>
    %c-2048144789_i32 = arith.constant -2048144789 : i32
    %33 = vector.broadcast %c-2048144789_i32 : i32 to vector<8x256xi32>
    %34 = arith.xori %32, %33 : vector<8x256xi32>
    %c16_i32_6 = arith.constant 16 : i32
    %35 = vector.broadcast %c16_i32_6 : i32 to vector<8x256xi32>
    %36 = arith.shrui %34, %35 : vector<8x256xi32>
    %37 = arith.xori %34, %36 : vector<8x256xi32>
    %c2146121005_i32_7 = arith.constant 2146121005 : i32
    %38 = vector.broadcast %c2146121005_i32_7 : i32 to vector<8x256xi32>
    %39 = arith.muli %37, %38 : vector<8x256xi32>
    %c15_i32_8 = arith.constant 15 : i32
    %40 = vector.broadcast %c15_i32_8 : i32 to vector<8x256xi32>
    %41 = arith.shrui %39, %40 : vector<8x256xi32>
    %42 = arith.xori %39, %41 : vector<8x256xi32>
    %c-2073254261_i32_9 = arith.constant -2073254261 : i32
    %43 = vector.broadcast %c-2073254261_i32_9 : i32 to vector<8x256xi32>
    %44 = arith.muli %42, %43 : vector<8x256xi32>
    %c16_i32_10 = arith.constant 16 : i32
    %45 = vector.broadcast %c16_i32_10 : i32 to vector<8x256xi32>
    %46 = arith.shrui %44, %45 : vector<8x256xi32>
    %47 = arith.xori %44, %46 : vector<8x256xi32>
    %c8_i32_11 = arith.constant 8 : i32
    %48 = vector.broadcast %c8_i32_11 : i32 to vector<8x256xi32>
    %49 = arith.shrui %32, %48 : vector<8x256xi32>
    %50 = arith.sitofp %49 : vector<8x256xi32> to vector<8x256xf32>
    %cst = arith.constant 1.000000e+00 : f32
    %51 = vector.broadcast %cst : f32 to vector<8x256xf32>
    %52 = arith.addf %50, %51 : vector<8x256xf32>
    %cst_12 = arith.constant 5.96046448E-8 : f32
    %53 = vector.broadcast %cst_12 : f32 to vector<8x256xf32>
    %54 = arith.mulf %52, %53 : vector<8x256xf32>
    %c8_i32_13 = arith.constant 8 : i32
    %55 = vector.broadcast %c8_i32_13 : i32 to vector<8x256xi32>
    %56 = arith.shrui %47, %55 : vector<8x256xi32>
    %57 = arith.sitofp %56 : vector<8x256xi32> to vector<8x256xf32>
    %cst_14 = arith.constant 5.96046448E-8 : f32
    %58 = vector.broadcast %cst_14 : f32 to vector<8x256xf32>
    %59 = arith.mulf %57, %58 : vector<8x256xf32>
    %60 = math.log %54 : vector<8x256xf32>
    %cst_15 = arith.constant -2.000000e+00 : f32
    %61 = vector.broadcast %cst_15 : f32 to vector<8x256xf32>
    %62 = arith.mulf %61, %60 : vector<8x256xf32>
    %63 = math.sqrt %62 : vector<8x256xf32>
    %cst_16 = arith.constant 6.28318548 : f32
    %64 = vector.broadcast %cst_16 : f32 to vector<8x256xf32>
    %65 = arith.mulf %64, %59 : vector<8x256xf32>
    %66 = math.cos %65 : vector<8x256xf32>
    %67 = arith.mulf %63, %66 : vector<8x256xf32>
    %c0_17 = arith.constant 0 : index
    %c0_18 = arith.constant 0 : index
    %68 = vector.load %arg2[%c0_17, %c0_18] : memref<16x256xf32, #tpu.memory_space<vmem>>, vector<8x256xf32>
    tpu.vector_store %arg2[%c0_17, %c0_18], %67 {strides = array<i32>} : memref<16x256xf32, #tpu.memory_space<vmem>>, vector<8x256xf32>,
    %69 = math.sin %65 : vector<8x256xf32>
    %70 = arith.mulf %63, %69 : vector<8x256xf32>
    %c8 = arith.constant 8 : index
    %c0_19 = arith.constant 0 : index
    %71 = vector.load %arg2[%c8, %c0_19] : memref<16x256xf32, #tpu.memory_space<vmem>>, vector<8x256xf32>
    tpu.vector_store %arg2[%c8, %c0_19], %70 {strides = array<i32>} : memref<16x256xf32, #tpu.memory_space<vmem>>, vector<8x256xf32>,
    return
  }
  func.func @transform_0(%arg0: i32, %arg1: memref<1xi32, #tpu.memory_space<smem>>) -> (i32, i32) {
    %c0_i32 = arith.constant 0 : i32
    %c0_i32_0 = arith.constant 0 : i32
    return %arg0, %c0_i32 : i32, i32
  }
}

</mosaic_0001>

<bundles_post_ra>
// kernel: tpu_custom_call.1
= control target key start
LH: loop header
LB: loop body
LE: loop exit
PB: predicated region body
PF: predicated region fallthrough
CT: control target
= control target key end

     0   :  { %7 = vsyncpa [#allocation5], 0  ;;  %v9_v0 = vlaneseq  ;;  %s820_s21 = smov 256   ;;  %s821_s22 = smov 16   ;;  %s1028_s0 = inlined_call_operand.<no memory space> [shape: s32[1], index: 0, kind: input, shape index: {}]   ;;  %s1029_s1 = inlined_call_operand.hbm [shape: f32[16,256], index: 1, kind: output, shape index: {}]  }
   0x1   :  { %s20_s8 = sadd.s32 2654435769, %s1028_s0  ;;  %s819_s0 = smov [#allocation4]  }
   0x2   :  { %s21_s9 = sshrl.u32 %s20_s8, 16  ;;  %v10_v1 = vshrl.u32 %v9_v0, 7  ;;  %v12_v2 = vand.u32 127, %v9_v0  ;;  %s742_s17 = sshll.u32 %s819_s0, 4  ;;  %s743_s17 = int_to_ptr.vmem [resolvable:$true] %s742_s17 }
   0x3   :  { %s22_s10 = sxor.u32 %s21_s9, %s20_s8  ;;  %s744_s20 = sshll.u32 %s1029_s1, 4  ;;  %s745_s20 = int_to_ptr.hbm [resolvable:$true] %s744_s20 }
   0x4   :  { %s23_s11 = smul.u32 2146121005, %s22_s10  ;;  %v13_v3 = vadd.s32 128, %v12_v2  ;;  %v14_v4 = vshll.u32 %v10_v1, 8 }
   0x6   :  { %s24_s12 = sshrl.u32 %s23_s11, 15  ;;  %v17_v5 = vadd.s32 %v14_v4, %v12_v2  ;;  %v18_v6 = vadd.s32 %v14_v4, %v13_v3 }
   0x7   :  { %s25_s13 = sxor.u32 %s24_s12, %s23_s11 }
   0x8   :  { %s26_s14 = smul.u32 2221713035, %s25_s13 }
   0xa   :  { %s27_s15 = sshrl.u32 %s26_s14, 16 }
   0xb   :  { %s28_s16 = sxor.u32 %s27_s15, %s26_s14 }
   0xc   :  { %v29_v7 = vstv %s28_s16 }
   0xd   :  { %v30_v8 = vxor.u32 %v29_v7, %v17_v5  ;;  %v31_v9 = vxor.u32 %v29_v7, %v18_v6 }
   0xf   :  { %v32_v10 = vshrl.u32 %v30_v8, 16  ;;  %v33_v11 = vshrl.u32 %v31_v9, 16 }
  0x11   :  { %v34_v12 = vxor.u32 %v32_v10, %v30_v8  ;;  %v35_v13 = vxor.u32 %v33_v11, %v31_v9  ;;  %v812_v11 = vmov 683565275  }
  0x13   :  { %v36_v14 = vmul.u32 2146121005, %v34_v12  ;;  %v37_v15 = vmul.u32 2146121005, %v35_v13  ;;  %v813_v13 = vmov 2475754826  }
  0x15   :  { %v38_v16 = vshrl.u32 %v36_v14, 15  ;;  %v39_v17 = vshrl.u32 %v37_v15, 15 }
  0x17   :  { %v40_v18 = vxor.u32 %v38_v16, %v36_v14  ;;  %v41_v19 = vxor.u32 %v39_v17, %v37_v15  ;;  %v814_v15 = vmov 2131351028   ;;  %v815_v17 = vmov 2102212464  }
  0x19   :  { %v42_v20 = vmul.u32 2221713035, %v40_v18  ;;  %v43_v21 = vmul.u32 2221713035, %v41_v19 }
  0x1b   :  { %v44_v22 = vshrl.u32 %v42_v20, 16  ;;  %v45_v23 = vshrl.u32 %v43_v21, 16 }
  0x1d   :  { %v46_v24 = vxor.u32 %v44_v22, %v42_v20  ;;  %v835_v25 = vxor.u32 %v45_v23, %v43_v21 }
  0x1f   :  { %v48_v26 = vxor.u32 2246822507, %v46_v24  ;;  %v49_v27 = vxor.u32 2246822507, %v835_v25  ;;  %v66_v48 = vshrl.u32 %v46_v24, 8 }
  0x21   :  { %v50_v28 = vshrl.u32 %v48_v26, 16  ;;  %v51_v29 = vshrl.u32 %v49_v27, 16  ;;  %v68_v53 = vcvt.s32.f32 %v66_v48 }
  0x23   :  { %v52_v30 = vxor.u32 %v50_v28, %v48_v26  ;;  %v53_v31 = vxor.u32 %v51_v29, %v49_v27  ;;  %v70_v59 = vadd.f32 1.0, %v68_v53  ;;  %v816_v27 = vmov 920167782  }
  0x25   :  { %v54_v32 = vmul.u32 2146121005, %v52_v30  ;;  %v55_v33 = vmul.u32 2146121005, %v53_v31  ;;  %v72_v2 = vmul.f32 5.9604645e-08, %v70_v59 }
  0x26   :  { %v817_v30 = vmov 1326507024  }
  0x27   :  { %v56_v34 = vshrl.u32 %v54_v32, 15  ;;  %v57_v35 = vshrl.u32 %v55_v33, 15  ;;  %778 = vlog2.f32 %v72_v2 }
  0x29   :  { %v58_v36 = vxor.u32 %v56_v34, %v54_v32  ;;  %v59_v37 = vxor.u32 %v57_v35, %v55_v33 }
  0x2b   :  { %v60_v38 = vmul.u32 2221713035, %v58_v36  ;;  %v61_v39 = vmul.u32 2221713035, %v59_v37 }
  0x2d   :  { %v62_v40 = vshrl.u32 %v60_v38, 16  ;;  %v63_v41 = vshrl.u32 %v61_v39, 16  ;;  %v865_v35 = vpop.eup %778 }
  0x2f   :  { %v64_v42 = vxor.u32 %v62_v40, %v60_v38  ;;  %v65_v43 = vxor.u32 %v63_v41, %v61_v39 }
  0x31   :  { %v74_v44 = vshrl.u32 %v64_v42, 8  ;;  %v75_v45 = vshrl.u32 %v65_v43, 8 }
  0x33   :  { %v76_v46 = vcvt.s32.f32 %v74_v44  ;;  %v77_v47 = vcvt.s32.f32 %v75_v45 }
  0x35   :  { %v78_v49 = vmul.f32 5.9604645e-08, %v76_v46  ;;  %v79_v50 = vmul.f32 5.9604645e-08, %v77_v47 }
  0x37   :  { %v838_v51 = vmul.f32 6.2831855, %v78_v49  ;;  %v840_v52 = vmul.f32 6.2831855, %v79_v50 }
  0x39   :  { %v112_v54 = vand.u32 2147483647, %v838_v51  ;;  %v115_v55 = vand.u32 2139095040, %v838_v51  ;;  %v269_v56 = vand.u32 2139095040, %v840_v52  ;;  %v266_v63 = vand.u32 2147483647, %v840_v52 }
  0x3b   :  { %v116_v57 = vshrl.u32 %v115_v55, 23  ;;  %v119_v58 = vand.u32 8388607, %v112_v54  ;;  %v270_v60 = vshrl.u32 %v269_v56, 23  ;;  %v273_v6 = vand.u32 8388607, %v266_v63 }
  0x3d   :  { %v756_v61 = vadd.s32 4294967169, %v116_v57  ;;  %v120_v62 = vor.u32 8388608, %v119_v58  ;;  %v759_v0 = vadd.s32 4294967169, %v270_v60  ;;  %v274_v20 = vor.u32 8388608, %v273_v6 }
  0x3f   :  { %v122_v1 = vadd.s32 1, %v756_v61  ;;  %v276_v3 = vadd.s32 1, %v759_v0  ;;  %v848_v5 = vshll.u32 %v120_v62, 8  ;;  %v874_v55 = vshll.u32 %v274_v20, 8 }
  0x41   :  { %vm123_vm0 = vcmp.gt.s32.totalorder %v122_v1, 0  ;;  %vm277_vm1 = vcmp.gt.s32.totalorder %v276_v3, 0  ;;  %v161_v19 = vand.u32 65535, %v848_v5  ;;  %v162_v23 = vshrl.u32 %v848_v5, 16 }
  0x42   :  { %v124_v4 = vsel %vm123_vm0, %v122_v1, 0  ;;  %v278_v8 = vsel %vm277_vm1, %v276_v3, 0 }
  0x43   :  { %v126_v7 = vand.u32 31, %v124_v4  ;;  %v125_v9 = vshrl.u32 %v124_v4, 5  ;;  %v858_v24 = vand.u32 31, %v278_v8  ;;  %v872_v53 = vshrl.u32 %v278_v8, 5 }
  0x45   :  { %v127_v10 = vsub.s32 32, %v126_v7  ;;  %v129_v12 = vshll.u32 %v812_v11, %v126_v7  ;;  %v132_v14 = vshll.u32 %v813_v13, %v126_v7  ;;  %v135_v16 = vshll.u32 %v814_v15, %v126_v7 }
  0x46   :  { %v138_v18 = vshll.u32 %v815_v17, %v126_v7  ;;  %v141_v29 = vshll.u32 %v816_v27, %v126_v7  ;;  %vm144_vm2 = vcmp.lt.s32.totalorder %v125_v9, 1  ;;  %vm146_vm3 = vcmp.lt.s32.totalorder %v125_v9, 3 }
  0x47   :  { %v130_v21 = vshrl.u32 %v813_v13, %v127_v10  ;;  %v133_v22 = vshrl.u32 %v814_v15, %v127_v10  ;;  %v136_v26 = vshrl.u32 %v815_v17, %v127_v10  ;;  %v139_v28 = vshrl.u32 %v816_v27, %v127_v10 }
  0x48   :  { %v142_v31 = vshrl.u32 %v817_v30, %v127_v10  ;;  %v128_v32 = vshrl.u32 %v812_v11, %v127_v10  ;;  %vm145_vm4 = vcmp.lt.s32.totalorder %v125_v9, 2  ;;  %vm147_vm5 = vcmp.lt.s32.totalorder %v125_v9, 4 }
  0x49   :  { %v131_v33 = vor.u32 %v130_v21, %v129_v12  ;;  %v134_v34 = vor.u32 %v133_v22, %v132_v14  ;;  %v137_v36 = vor.u32 %v136_v26, %v135_v16  ;;  %v140_v37 = vor.u32 %v139_v28, %v138_v18 }
  0x4a   :  { %v143_v38 = vor.u32 %v142_v31, %v141_v29  ;;  %v868_v40 = vsub.s32 32, %v858_v24  ;;  %v283_v61 = vshll.u32 %v812_v11, %v858_v24  ;;  %v286_v0 = vshll.u32 %v813_v13, %v858_v24 }
  0x4b   :  { %v152_v39 = vsel %vm144_vm2, %v131_v33, %v134_v34  ;;  %v149_v41 = vsel %vm147_vm5, %v137_v36, 2102212464  ;;  %v153_v42 = vsel %vm147_vm5, %v140_v37, 920167782  ;;  %v156_v43 = vsel %vm144_vm2, %v134_v34, %v137_v36 }
  0x4c   :  { %v157_v44 = vsel %vm147_vm5, %v143_v38, 1326507024  ;;  %v148_v45 = vsel %vm144_vm2, %v128_v32, %v131_v33  ;;  %v150_v46 = vsel %vm146_vm3, %v134_v34, %v149_v41  ;;  %v154_v47 = vsel %vm146_vm3, %v137_v36, %v153_v42 }
  0x4d   :  { %v158_v48 = vsel %vm146_vm3, %v140_v37, %v157_v44  ;;  %v155_v49 = vsel %vm145_vm4, %v152_v39, %v154_v47  ;;  %v877_v60 = vsel %vm145_vm4, %v148_v45, %v150_v46  ;;  %v284_v62 = vshrl.u32 %v813_v13, %v868_v40 }
  0x4e   :  { %v159_v50 = vsel %vm145_vm4, %v156_v43, %v158_v48  ;;  %v185_v58 = vand.u32 65535, %v155_v49  ;;  %v186_v59 = vshrl.u32 %v155_v49, 16  ;;  %v287_v4 = vshrl.u32 %v814_v15, %v868_v40 }
  0x4f   :  { %v163_v56 = vand.u32 65535, %v159_v50  ;;  %v164_v57 = vshrl.u32 %v159_v50, 16  ;;  %v885_v28 = vor.u32 %v284_v62, %v283_v61  ;;  %v818_v29 = vmov 0  }
  0x50   :  { %v187_v7 = vmul.u32 %v185_v58, %v161_v19  ;;  %v188_v8 = vmul.u32 %v186_v59, %v161_v19  ;;  %v189_v10 = vmul.u32 %v185_v58, %v162_v23  ;;  %v190_v16 = vmul.u32 %v186_v59, %v162_v23 }
  0x51   :  { %v165_v1 = vmul.u32 %v163_v56, %v161_v19  ;;  %v166_v2 = vmul.u32 %v164_v57, %v161_v19  ;;  %v167_v3 = vmul.u32 %v163_v56, %v162_v23  ;;  %v168_v6 = vmul.u32 %v164_v57, %v162_v23 }
  0x52   :  { %v191_v20 = vshll.u32 %v188_v8, 16  ;;  %v192_v21 = vshrl.u32 %v188_v8, 16  ;;  %v193_v22 = vshll.u32 %v189_v10, 16  ;;  %v194_v26 = vshrl.u32 %v189_v10, 16 }
  0x53   :  { %v169_v9 = vshll.u32 %v166_v2, 16  ;;  %v170_v12 = vshrl.u32 %v166_v2, 16  ;;  %v171_v14 = vshll.u32 %v167_v3, 16  ;;  %v172_v18 = vshrl.u32 %v167_v3, 16 }
  0x54   :  { %vm195_vm7 = vc.u32 %v187_v7, %v191_v20  ;;  %v197_v32 = vadd.s32 %v191_v20, %v187_v7  ;;  %v289_v19 = vshll.u32 %v814_v15, %v858_v24  ;;  %v290_v34 = vshrl.u32 %v815_v17, %v868_v40 }
  0x55   :  { %vm173_vm6 = vc.u32 %v165_v1, %v169_v9  ;;  %v175_v13 = vadd.s32 %v169_v9, %v165_v1  ;;  %v196_v23 = vsel %vm195_vm7, 1, %v818_v29  ;;  %v894_v38 = vor.u32 %v287_v4, %v286_v0 }
  0x56   :  { %v174_v31 = vsel %vm173_vm6, 1, %v818_v29  ;;  %v198_v37 = vadd.s32 %v196_v23, %v190_v16  ;;  %vm199_vm9 = vc.u32 %v197_v32, %v193_v22  ;;  %v897_v42 = vadd.s32 %v197_v32, %v193_v22 }
  0x57   :  { %v176_v33 = vadd.s32 %v174_v31, %v168_v6  ;;  %vm177_vm8 = vc.u32 %v175_v13, %v171_v14  ;;  %v200_v41 = vsel %vm199_vm9, 1, %v818_v29  ;;  %v292_v15 = vshll.u32 %v815_v17, %v858_v24 }
  0x58   :  { %v178_v36 = vsel %vm177_vm8, 1, %v818_v29  ;;  %v202_v43 = vadd.s32 %v200_v41, %v198_v37  ;;  %v293_v44 = vshrl.u32 %v816_v27, %v868_v40  ;;  %v295_v45 = vshll.u32 %v816_v27, %v858_v24 }
  0x59   :  { %v180_v39 = vadd.s32 %v178_v36, %v176_v33  ;;  %v296_v46 = vshrl.u32 %v817_v30, %v868_v40  ;;  %v291_v48 = vor.u32 %v290_v34, %v289_v19  ;;  %vm298_vm10 = vcmp.lt.s32.totalorder %v872_v53, 1 }
  0x5a   :  { %vm300_vm11 = vcmp.lt.s32.totalorder %v872_v53, 3  ;;  %v203_v49 = vadd.s32 %v202_v43, %v192_v21  ;;  %v294_v50 = vor.u32 %v293_v44, %v292_v15  ;;  %vm301_vm12 = vcmp.lt.s32.totalorder %v872_v53, 4 }
  0x5b   :  { %v181_v47 = vadd.s32 %v180_v39, %v170_v12  ;;  %v297_v56 = vor.u32 %v296_v46, %v295_v45  ;;  %vm299_vm13 = vcmp.lt.s32.totalorder %v872_v53, 2  ;;  %v306_v24 = vsel %vm298_vm10, %v885_v28, %v894_v38 }
  0x5c   :  { %v67_v27 = vshrl.u32 %v835_v25, 8  ;;  %v204_v30 = vadd.s32 %v203_v49, %v194_v26  ;;  %v307_v57 = vsel %vm301_vm12, %v294_v50, 920167782  ;;  %v315_v58 = vand.u32 65535, %v874_v55 }
  0x5d   :  { %v910_v17 = vadd.s32 %v181_v47, %v172_v18  ;;  %v205_v59 = vmul.u32 %v848_v5, %v877_v60  ;;  %v308_v61 = vsel %vm300_vm11, %v291_v48, %v307_v57  ;;  %v310_v62 = vsel %vm298_vm10, %v894_v38, %v291_v48 }
  0x5e   :  { %v208_v25 = vadd.s32 1, %v204_v30  ;;  %v309_v0 = vsel %vm299_vm13, %v306_v24, %v308_v61  ;;  %v311_v1 = vsel %vm301_vm12, %v297_v56, 1326507024  ;;  %v316_v2 = vshrl.u32 %v874_v55, 16 }
  0x5f   :  { %vm207_vm14 = vc.u32 %v910_v17, %v897_v42  ;;  %v312_v5 = vsel %vm300_vm11, %v294_v50, %v311_v1  ;;  %v339_v60 = vand.u32 65535, %v309_v0  ;;  %v340_v3 = vshrl.u32 %v309_v0, 16 }
  0x60   :  { %v69_v4 = vcvt.s32.f32 %v67_v27  ;;  %v81_v6 = vmul.f32 0.6931472, %v865_v35  ;;  %v209_v7 = vsel %vm207_vm14, %v208_v25, %v204_v30  ;;  %v313_v8 = vsel %vm299_vm13, %v310_v62, %v312_v5 }
  0x61   :  { %v210_v10 = vadd.s32 %v209_v7, %v205_v59  ;;  %v317_v9 = vand.u32 65535, %v313_v8  ;;  %v318_v12 = vshrl.u32 %v313_v8, 16  ;;  %v341_v14 = vmul.u32 %v339_v60, %v315_v58 }
  0x62   :  { %v342_v16 = vmul.u32 %v340_v3, %v315_v58  ;;  %v343_v18 = vmul.u32 %v339_v60, %v316_v2  ;;  %v71_v26 = vadd.f32 1.0, %v69_v4  ;;  %v940_v31 = vmul.f32 -2.0, %v81_v6 }
  0x63   :  { %v211_v20 = vadd.s32 536870912, %v210_v10  ;;  %v319_v21 = vmul.u32 %v317_v9, %v315_v58  ;;  %v320_v22 = vmul.u32 %v318_v12, %v315_v58  ;;  %v321_v13 = vmul.u32 %v317_v9, %v316_v2 }
  0x64   :  { %v345_v32 = vshll.u32 %v342_v16, 16  ;;  %v322_v35 = vmul.u32 %v318_v12, %v316_v2  ;;  %v282_v34 = vshrl.u32 %v812_v11, %v868_v40  ;;  %v344_v36 = vmul.u32 %v340_v3, %v316_v2 }
  0x65   :  { %v942_v19 = vshrl.u32 %v211_v20, 30  ;;  %v323_v33 = vshll.u32 %v320_v22, 16  ;;  %v325_v23 = vshll.u32 %v321_v13, 16  ;;  %v347_v37 = vshll.u32 %v343_v18, 16 }
  0x66   :  { %vm349_vm15 = vc.u32 %v341_v14, %v345_v32  ;;  %v303_v41 = vsel %vm301_vm12, %v291_v48, 2102212464  ;;  %v346_v44 = vshrl.u32 %v342_v16, 16  ;;  %v351_v46 = vadd.s32 %v345_v32, %v341_v14 }
  0x67   :  { %v213_v39 = vshll.u32 %v942_v19, 30  ;;  %vm327_vm0 = vc.u32 %v319_v21, %v323_v33  ;;  %v329_v15 = vadd.s32 %v323_v33, %v319_v21  ;;  %v350_v45 = vsel %vm349_vm15, 1, %v818_v29 }
  0x68   :  { %v328_v43 = vsel %vm327_vm0, 1, %v818_v29  ;;  %v324_v49 = vshrl.u32 %v320_v22, 16  ;;  %v326_v11 = vshrl.u32 %v321_v13, 16  ;;  %v352_v56 = vadd.s32 %v350_v45, %v344_v36 }
  0x69   :  { %v214_v47 = vsub.s32 %v210_v10, %v213_v39  ;;  %v330_v50 = vadd.s32 %v328_v43, %v322_v35  ;;  %vm331_vm1 = vc.u32 %v329_v15, %v325_v23  ;;  %vm353_vm2 = vc.u32 %v351_v46, %v347_v37 }
  0x6a   :  { %v332_v40 = vsel %vm331_vm1, 1, %v818_v29  ;;  %v354_v27 = vsel %vm353_vm2, 1, %v818_v29  ;;  %v302_v30 = vsel %vm298_vm10, %v282_v34, %v885_v28  ;;  %v304_v57 = vsel %vm300_vm11, %v894_v38, %v303_v41 }
  0x6b   :  { %vm215_vm3 = vcmp.lt.s32.totalorder %v214_v47, 0  ;;  %v216_v24 = vsub.s32 0, %v214_v47  ;;  %v334_v48 = vadd.s32 %v332_v40, %v330_v50  ;;  %v348_v58 = vshrl.u32 %v343_v18, 16 }
  0x6c   :  { %v356_v59 = vadd.s32 %v354_v27, %v352_v56  ;;  %v73_v61 = vmul.f32 5.9604645e-08, %v71_v26  ;;  %v355_v1 = vadd.s32 %v351_v46, %v347_v37  ;;  %780 = vrsqrt.f32 %v940_v31 }
  0x6d   :  { %v217_v62 = vsel %vm215_vm3, %v216_v24, %v214_v47  ;;  %v335_v25 = vadd.s32 %v334_v48, %v324_v49  ;;  %v305_v29 = vsel %vm299_vm13, %v302_v30, %v304_v57  ;;  %v206_v38 = vadd.s32 %v897_v42, %v910_v17 }
  0x6e   :  { %v218_v0 = vclz %v217_v62  ;;  %v357_v2 = vadd.s32 %v356_v59, %v346_v44  ;;  %782 = vlog2.f32 %v73_v61  ;;  %v359_v3 = vmul.u32 %v874_v55, %v305_v29 }
  0x6f   :  { %v336_v5 = vadd.s32 %v335_v25, %v326_v11  ;;  %vm973_vm6 = vcmp.le.f32.partialorder %v112_v54, 0.7853982  ;;  %vm114_vm7 = vcmp.lt.s32.totalorder %v838_v51, 0  ;;  %v236_v39 = vsub.s32 4, %v942_v19 }
  0x70   :  { %v757_v60 = vadd.s32 4294967294, %v218_v0  ;;  %v358_v28 = vadd.s32 %v357_v2, %v348_v58  ;;  %vm93_vm10 = vcmp.eq.f32.partialorder %v940_v31, inf  ;;  %vm95_vm11 = vcmp.eq.f32.partialorder %v940_v31, 0.0 }
  0x71   :  { %vm361_vm5 = vc.u32 %v336_v5, %v355_v1  ;;  %v237_v46 = vsel %vm114_vm7, %v236_v39, %v942_v19  ;;  %v360_v48 = vadd.s32 %v355_v1, %v336_v5  ;;  %vm268_vm15 = vcmp.lt.s32.totalorder %v840_v52, 0 }
  0x72   :  { %vm758_vm4 = vcmp.lt.s32.totalorder %v757_v60, 0  ;;  %v362_v4 = vadd.s32 1, %v358_v28  ;;  %v781_v9 = vpop.eup %780  ;;  %v239_v40 = vsel %vm973_vm6, 0, %v237_v46  ;;  %vm255_vm3 = vweird.f32 %v838_v51 }
  0x73   :  { %v221_v6 = vsel %vm758_vm4, 0, %v757_v60  ;;  %v87_v20 = vmul.f32 %v781_v9, %v940_v31  ;;  %v568_v25 = vadd.s32 3, %v239_v40  ;;  %vm1001_vm4 = vcmp.le.f32.partialorder %v266_v63, 0.7853982 }
  0x74   :  { %v222_v7 = vsub.s32 32, %v221_v6  ;;  %v223_v8 = vshll.u32 %v214_v47, %v221_v6  ;;  %v226_v10 = vsub.s32 4294967266, %v221_v6  ;;  %v363_v12 = vsel %vm361_vm5, %v362_v4, %v358_v28  ;;  %v783_v18 = vpop.eup %782 }
  0x75   :  { %v364_v16 = vadd.s32 %v363_v12, %v359_v3  ;;  %v83_v26 = vmul.f32 0.6931472, %v783_v18  ;;  %v88_v32 = vmul.f32 %v781_v9, %v87_v20  ;;  %v256_v3 = vand.u32 3, %v239_v40 }
  0x76   :  { %v224_v53 = vshrl.u32 %v206_v38, %v222_v7  ;;  %v227_v14 = vadd.s32 127, %v226_v10  ;;  %v569_v7 = vand.u32 3, %v568_v25 }
  0x77   :  { %v365_v42 = vadd.s32 536870912, %v364_v16  ;;  %v969_v36 = vmul.f32 -2.0, %v83_v26  ;;  %v89_v41 = vmul.f32 0.5, %v88_v32  ;;  %vm261_vm12 = vcmp.eq.s32.totalorder %v256_v3, 2 }
  0x78   :  { %v225_v21 = vor.u32 %v224_v53, %v223_v8  ;;  %v228_v22 = vshll.u32 %v227_v14, 23  ;;  %v96_v53 = vand.u32 2147483648, %v940_v31  ;;  %vm574_vm13 = vcmp.eq.s32.totalorder %v569_v7, 2 }
  0x79   :  { %v966_v55 = vshrl.u32 %v365_v42, 30  ;;  %784 = vrsqrt.f32 %v969_v36  ;;  %v90_v49 = vsub.f32 1.5, %v89_v41  ;;  %vm257_vm14 = vcmp.lt.s32.totalorder %v256_v3, 2 }
  0x7a   :  { %v229_v17 = vor.u32 4788187, %v228_v22  ;;  %v232_v13 = vcvt.s32.f32 %v225_v21  ;;  %vm258_vm0 = vcmp.eq.s32.totalorder %v256_v3, 0  ;;  %vm571_vm1 = vcmp.eq.s32.totalorder %v569_v7, 0 }
  0x7b   :  { %v367_v33 = vshll.u32 %v966_v55, 30  ;;  %v91_v27 = vmul.f32 %v781_v9, %v90_v49  ;;  %vm570_vm2 = vcmp.lt.s32.totalorder %v569_v7, 2  ;;  %vm105_vm5 = vcmp.eq.f32.partialorder %v969_v36, inf }
  0x7c   :  { %v230_v35 = vand.u32 2147483647, %v229_v17 }
  0x7d   :  { %v368_v34 = vsub.s32 %v364_v16, %v367_v33  ;;  %v92_v28 = vmul.f32 %v91_v27, %v940_v31 }
  0x7e   :  { %v233_v23 = vmul.f32 %v232_v13, %v230_v35  ;;  %v390_v13 = vsub.s32 4, %v966_v55 }
  0x7f   :  { %vm369_vm8 = vcmp.lt.s32.totalorder %v368_v34, 0  ;;  %v370_v43 = vsub.s32 0, %v368_v34  ;;  %v986_v19 = vpop.eup %784  ;;  %v94_v20 = vsel %vm93_vm10, %v940_v31, %v92_v28 }
  0x80   :  { %v234_v15 = vxor.u32 2147483648, %v233_v23  ;;  %v99_v1 = vmul.f32 %v986_v19, %v969_v36  ;;  %v391_v63 = vsel %vm268_vm15, %v390_v13, %v966_v55 }
  0x81   :  { %v371_v45 = vsel %vm369_vm8, %v370_v43, %v368_v34  ;;  %v393_v49 = vsel %vm1001_vm4, 0, %v391_v63  ;;  %vm107_vm8 = vcmp.eq.f32.partialorder %v969_v36, 0.0 }
  0x82   :  { %v235_v44 = vsel %vm114_vm7, %v234_v15, %v233_v23  ;;  %v372_v47 = vclz %v371_v45  ;;  %v100_v14 = vmul.f32 %v986_v19, %v99_v1 }
  0x83   :  { %v238_v54 = vsel %vm973_vm6, %v838_v51, %v235_v44 }
  0x84   :  { %v240_v50 = vmul.f32 %v238_v54, %v238_v54  ;;  %v760_v11 = vadd.s32 4294967294, %v372_v47  ;;  %v101_v41 = vmul.f32 0.5, %v100_v14 }
  0x86   :  { %v241_v56 = vmul.f32 -0.001358992, %v240_v50  ;;  %v248_v24 = vmul.f32 -0.00019511016, %v240_v50  ;;  %vm761_vm9 = vcmp.lt.s32.totalorder %v760_v11, 0  ;;  %v102_v40 = vsub.f32 1.5, %v101_v41 }
  0x87   :  { %v375_v58 = vsel %vm761_vm9, 0, %v760_v11 }
  0x88   :  { %v242_v30 = vadd.f32 0.041655596, %v241_v56  ;;  %v249_v57 = vadd.f32 0.008332121, %v248_v24  ;;  %v376_v59 = vsub.s32 32, %v375_v58  ;;  %v377_v61 = vshll.u32 %v368_v34, %v375_v58 }
  0x89   :  { %v380_v62 = vsub.s32 4294967266, %v375_v58  ;;  %v97_v34 = vsel %vm95_vm11, %v96_v53, %v94_v20 }
  0x8a   :  { %v243_v0 = vmul.f32 %v242_v30, %v240_v50  ;;  %v250_v2 = vmul.f32 %v249_v57, %v240_v50  ;;  %v378_v29 = vshrl.u32 %v360_v48, %v376_v59  ;;  %v723_v48 = vadd.s32 3, %v393_v49 }
  0x8b   :  { %v381_v60 = vadd.s32 127, %v380_v62  ;;  %v103_v30 = vmul.f32 %v986_v19, %v102_v40  ;;  %v410_v59 = vand.u32 3, %v393_v49 }
  0x8c   :  { %v244_v5 = vadd.f32 -0.4999988, %v243_v0  ;;  %v251_v38 = vadd.f32 -0.16666654, %v250_v2  ;;  %v379_v4 = vor.u32 %v378_v29, %v377_v61  ;;  %v724_v61 = vand.u32 3, %v723_v48 }
  0x8d   :  { %v382_v6 = vshll.u32 %v381_v60, 23  ;;  %v104_v0 = vmul.f32 %v103_v30, %v969_v36  ;;  %vm415_vm6 = vcmp.eq.s32.totalorder %v410_v59, 2  ;;  %v108_v60 = vand.u32 2147483648, %v969_v36 }
  0x8e   :  { %v245_v8 = vmul.f32 %v244_v5, %v240_v50  ;;  %v252_v10 = vmul.f32 %v251_v38, %v240_v50  ;;  %v386_v12 = vcvt.s32.f32 %v379_v4  ;;  %vm729_vm7 = vcmp.eq.s32.totalorder %v724_v61, 2 }
  0x8f   :  { %v383_v9 = vor.u32 4788187, %v382_v6  ;;  %v106_v1 = vsel %vm105_vm5, %v969_v36, %v104_v0  ;;  %vm411_vm9 = vcmp.lt.s32.totalorder %v410_v59, 2  ;;  %vm412_vm10 = vcmp.eq.s32.totalorder %v410_v59, 0 }
  0x90   :  { %v246_v16 = vadd.f32 1.0, %v245_v8  ;;  %v253_v18 = vadd.f32 1.0, %v252_v10  ;;  %vm726_vm11 = vcmp.eq.s32.totalorder %v724_v61, 0  ;;  %v109_v4 = vsel %vm107_vm8, %v108_v60, %v106_v1 }
  0x91   :  { %v384_v21 = vand.u32 2147483647, %v383_v9 }
  0x92   :  { %v254_v22 = vmul.f32 %v253_v18, %v238_v54  ;;  %v262_v42 = vxor.u32 2147483648, %v246_v16 }
  0x93   :  { %v387_v17 = vmul.f32 %v386_v12, %v384_v21 }
  0x94   :  { %v259_v26 = vxor.u32 2147483648, %v254_v22  ;;  %v263_v32 = vsel %vm261_vm12, %v262_v42, %v254_v22  ;;  %v576_v35 = vsel %vm574_vm13, %v262_v42, %v254_v22  ;;  %vm725_vm12 = vcmp.lt.s32.totalorder %v724_v61, 2 }
  0x95   :  { %v388_v23 = vxor.u32 2147483648, %v387_v17  ;;  %vm409_vm13 = vweird.f32 %v840_v52 }
  0x96   :  { %v260_v37 = vsel %vm258_vm0, %v246_v16, %v259_v26  ;;  %v573_v39 = vsel %vm571_vm1, %v246_v16, %v259_v26 }
  0x97   :  { %v264_v15 = vsel %vm257_vm14, %v260_v37, %v263_v32  ;;  %v389_v43 = vsel %vm268_vm15, %v388_v23, %v387_v17  ;;  %v577_v44 = vsel %vm570_vm2, %v573_v39, %v576_v35 }
  0x98   :  { %v265_v51 = vsel %vm255_vm3, nan, %v264_v15  ;;  %v392_v45 = vsel %vm1001_vm4, %v840_v52, %v389_v43  ;;  %v578_v31 = vsel %vm255_vm3, nan, %v577_v44 }
  0x99   :  { %v394_v46 = vmul.f32 %v392_v45, %v392_v45  ;;  %v420_v54 = vmul.f32 %v265_v51, %v97_v34  ;;  %v734_v47 = vmul.f32 %v578_v31, %v97_v34 }
  0x9b   :  { %v395_v50 = vmul.f32 -0.001358992, %v394_v46  ;;  %v402_v11 = vmul.f32 -0.00019511016, %v394_v46  ;;  %422 = vst [vmem:[#allocation4] sm:$0xff] %v420_v54 }
  0x9c   :  { %736 = vst [vmem:[#allocation4 + $0x10] sm:$0xff] %v734_v47 }
  0x9d   :  { %v396_v56 = vadd.f32 0.041655596, %v395_v50  ;;  %v403_v24 = vadd.f32 0.008332121, %v402_v11 }
  0x9f   :  { %v397_v55 = vmul.f32 %v396_v56, %v394_v46  ;;  %v404_v27 = vmul.f32 %v403_v24, %v394_v46 }
  0xa1   :  { %v398_v57 = vadd.f32 -0.4999988, %v397_v55  ;;  %v405_v58 = vadd.f32 -0.16666654, %v404_v27 }
  0xa3   :  { %v399_v62 = vmul.f32 %v398_v57, %v394_v46  ;;  %v406_v25 = vmul.f32 %v405_v58, %v394_v46 }
  0xa5   :  { %v400_v2 = vadd.f32 1.0, %v399_v62  ;;  %v407_v29 = vadd.f32 1.0, %v406_v25 }
  0xa7   :  { %v408_v28 = vmul.f32 %v407_v29, %v392_v45  ;;  %v416_v19 = vxor.u32 2147483648, %v400_v2 }
  0xa9   :  { %v413_v5 = vxor.u32 2147483648, %v408_v28  ;;  %v417_v38 = vsel %vm415_vm6, %v416_v19, %v408_v28  ;;  %v731_v3 = vsel %vm729_vm7, %v416_v19, %v408_v28 }
  0xab   :  { %v414_v6 = vsel %vm412_vm10, %v400_v2, %v413_v5  ;;  %v728_v7 = vsel %vm726_vm11, %v400_v2, %v413_v5 }
  0xac   :  { %v418_v8 = vsel %vm411_vm9, %v414_v6, %v417_v38  ;;  %v732_v36 = vsel %vm725_vm12, %v728_v7, %v731_v3 }
  0xad   :  { %v419_v10 = vsel %vm409_vm13, nan, %v418_v8  ;;  %v733_v9 = vsel %vm409_vm13, nan, %v732_v36 }
  0xae   :  { %v421_v12 = vmul.f32 %v419_v10, %v109_v4  ;;  %v735_v53 = vmul.f32 %v733_v9, %v109_v4 }
  0xb0   :  { %423 = vst [vmem:[#allocation4 + $0x8] sm:$0xff] %v421_v12 }
  0xb1   :  { %737 = vst [vmem:[#allocation4 + $0x18] sm:$0xff] %v735_v53 }
  0xb2   :  { %750 = dma.vmem_to_hbm [thread:$0]  %s743_s17, 512, %s745_s20, [#allocation5], %s820_s21, %s820_s21, %s821_s22  }
  0xb3   :  { %810 = dma.done.wait [#allocation5], 512  }
  0xb4   :  { %811 = vsyncadd [#allocation5], 4294966784 }
  0xb5   :  { %755 = vsyncpa [#allocation5], 1 }

</bundles_post_ra>
